<compile_context>
chip_gen: v7x
topology: tpu7x:2x2x1
jax: 0.10.0
libtpu: 0.0.40
codegen_flags: <defaults>
</compile_context>

<pallas_src>
import functools

import numpy as np
import jax
import jax.numpy as jnp
from jax.experimental import pallas as pl
from jax.experimental.pallas import tpu as pltpu


def _round_up(x, m):
    return ((x + m - 1) // m) * m


def _hw_plan():
    """(target input-tile bytes, vmem_limit_bytes), tuned per TPU generation."""
    cap = 64 * 1024 * 1024
    try:
        cap = int(getattr(pltpu.get_tpu_info(), "vmem_capacity_bytes", cap))
    except Exception:
        pass
    if cap >= 100 * 1024 * 1024:                 # v5e / v6e: 128 MiB physical VMEM
        return 12 * 1024 * 1024, 80 * 1024 * 1024
    return 4 * 1024 * 1024, 40 * 1024 * 1024      # v7x-class: 64 MiB per TensorCore


def _plan_tiles(n, l_out, target_bytes):
    """Pick (n_tile, l_tile): l_tile multiple of 128, main input block ~= target_bytes."""
    n_pad8 = _round_up(max(n, 1), 8)
    lp_full = _round_up(l_out, 128)
    l_tile = min(lp_full, 2048)                   # lane-width sweet spot
    rows = (target_bytes // ((l_tile + 128) * 4)) // 8 * 8
    n_tile = int(max(8, min(rows, n_pad8)))
    if n_tile == n_pad8 and l_tile < lp_full:
        # whole (padded) batch fits in one row tile -> spend remaining budget on L
        l_budget = (target_bytes // (n_tile * 4) - 128) // 128 * 128
        l_tile = int(max(l_tile, min(lp_full, l_budget)))
    return n_tile, l_tile


def _conv5(params_ref, xa_ref, xb_ref, xbuf_ref, width):
    """5-tap 'valid' cross-correlation along lanes, everything 128-lane aligned.

    xa_ref: (n_tile, width) main input block; xb_ref: (n_tile, 128) halo block
    holding the next 128 input columns.  Tap shifts go through pltpu.roll (XLU)
    and every slice starts at a multiple of 128 (no lane-offset slices).
    """
    xbuf_ref[:, :width] = xa_ref[...]
    xbuf_ref[:, width:] = xb_ref[...]
    x = xbuf_ref[...]                              # (n_tile, width + 128)
    full = width + 128
    y = x[:, :width] * params_ref[0]
    for k in range(1, 5):
        # rolled[:, j] == x[:, j + k] for j < width (wrap only touches j >= full - k)
        y = y + pltpu.roll(x, full - k, 1)[:, :width] * params_ref[k]
    return y + params_ref[5]


def _conv5_stats_kernel(params_ref, xa_ref, xb_ref, stats_ref, xbuf_ref, *,
                        n_tile, l_tile, num_l_tiles, l_out, n_valid):
    """Phase 1: 5-tap conv + per-tile shifted partial sums.

    stats block (1,1,8,128): row 0 = sum(y - c), row 1 = sum((y - c)^2), row 2 = c.
    """
    y = _conv5(params_ref, xa_ref, xb_ref, xbuf_ref, l_tile)

    # Per-tile shift (numerical robustness of the single-pass variance); exact
    # correction happens in the wrapper combine.
    c = jnp.sum(y[:, :128]) * (1.0 / (n_tile * 128))
    d = y - c

    last_j = num_l_tiles - 1
    v_last = l_out - last_j * l_tile               # valid columns in the last L-tile
    v_full = (v_last // 128) * 128

    def emit(s_row, q_row):
        # Row mask only when the batch is padded; acts on tiny (n_tile, 1) vectors.
        if n_valid % n_tile != 0:
            row = (pl.program_id(0) * n_tile
                   + jax.lax.broadcasted_iota(jnp.int32, (n_tile, 1), 0))
            keep = row < n_valid
            s_row = jnp.where(keep, s_row, 0.0)
            q_row = jnp.where(keep, q_row, 0.0)
        s = jnp.sum(s_row)
        q = jnp.sum(q_row)
        sub = jax.lax.broadcasted_iota(jnp.int32, (8, 128), 0)
        blk = (jnp.where(sub == 0, s, 0.0)
               + jnp.where(sub == 1, q, 0.0)
               + jnp.where(sub == 2, c, 0.0))
        stats_ref[...] = blk[None, None]

    def full_tile():                                # fully valid L-tile: no column mask
        emit(jnp.sum(d, axis=1, keepdims=True),
             jnp.sum(d * d, axis=1, keepdims=True))

    def last_tile():                                # mask only the final partial block
        s_row = jnp.zeros((n_tile, 1), jnp.float32)
        q_row = jnp.zeros((n_tile, 1), jnp.float32)
        if v_full > 0:
            dm = d[:, :v_full]
            s_row = s_row + jnp.sum(dm, axis=1, keepdims=True)
            q_row = q_row + jnp.sum(dm * dm, axis=1, keepdims=True)
        if v_last > v_full:
            col = v_full + jax.lax.broadcasted_iota(jnp.int32, (n_tile, 128), 1)
            dt = jnp.where(col < v_last, d[:, v_full:v_full + 128], 0.0)
            s_row = s_row + jnp.sum(dt, axis=1, keepdims=True)
            q_row = q_row + jnp.sum(dt * dt, axis=1, keepdims=True)
        emit(s_row, q_row)

    if num_l_tiles > 1:
        pl.when(pl.program_id(1) != last_j)(full_tile)
        pl.when(pl.program_id(1) == last_j)(last_tile)
    else:
        last_tile()


def _conv5_affine_kernel(params_ref, xa_ref, xb_ref, o_ref, xbuf_ref, *, l_tile):
    """Phase 2: 5-tap conv with BN scale/shift folded into the weights."""
    o_ref[...] = _conv5(params_ref, xa_ref, xb_ref, xbuf_ref, l_tile)


def model_forward(x, conv_w, conv_b, bn_gamma, bn_beta, bn_eps=1e-5):
    """x: (N, 1, L) float32.  Returns BN(conv(conv(x))): (N, 1, L-4) float32."""
    N, C, L = x.shape
    assert C == 1, "Model uses a single channel"
    assert L > 4, "Need L > 4 for two valid 3-tap convs"

    L_out = L - 4
    target_bytes, vmem_limit = _hw_plan()
    n_tile, l_tile = _plan_tiles(N, L_out, target_bytes)

    n_pad = _round_up(N, n_tile)
    num_n_tiles = n_pad // n_tile
    num_l_tiles = -(-L_out // l_tile)
    lp_out = num_l_tiles * l_tile                 # lane-dense padded output width
    lin_pad = lp_out + 128                        # +128-column halo after the last tile
    lt_blocks = l_tile // 128

    x2d = x[:, 0, :].astype(jnp.float32)
    # TODO(synk): storing xp as bf16 (cast back to f32 in-kernel) would cut the
    # twice-read input's HBM traffic ~2x; kept f32 to preserve exact f32 semantics.
    xp = jnp.pad(x2d, ((0, n_pad - N), (0, lin_pad - L)))

    # ---- compose the two 3-tap convs into one 5-tap conv (once, in the wrapper) ----
    w3 = conv_w[0, 0, :].astype(jnp.float32)      # (3,)
    b3 = conv_b[0].astype(jnp.float32)
    w5 = jnp.convolve(w3, w3)                     # (5,)
    b5 = b3 * jnp.sum(w3) + b3
    params1 = jnp.concatenate([w5, b5[None]]).astype(jnp.float32)   # f32[6]

    comp = pltpu.CompilerParams(
        dimension_semantics=("parallel", "parallel"),
        vmem_limit_bytes=vmem_limit,
    )
    grid = (num_n_tiles, num_l_tiles)
    in_specs = [
        pl.BlockSpec(memory_space=pltpu.MemorySpace.SMEM),                   # params
        pl.BlockSpec((n_tile, l_tile), lambda i, j: (i, j)),                 # main block
        pl.BlockSpec((n_tile, 128), lambda i, j: (i, (j + 1) * lt_blocks)),  # halo block
    ]
    scratch = [pltpu.VMEM((n_tile, l_tile + 128), jnp.float32)]

    # ---- phase 1: conv + per-tile shifted (sum, sumsq, shift) partials -------------
    stats = pl.pallas_call(
        functools.partial(_conv5_stats_kernel, n_tile=n_tile, l_tile=l_tile,
                          num_l_tiles=num_l_tiles, l_out=L_out, n_valid=N),
        out_shape=jax.ShapeDtypeStruct((num_n_tiles, num_l_tiles, 8, 128), jnp.float32),
        grid=grid,
        in_specs=in_specs,
        out_specs=pl.BlockSpec((1, 1, 8, 128), lambda i, j: (i, j, 0, 0)),
        scratch_shapes=scratch,
        compiler_params=comp,
    )(params1, xp, xp)

    # ---- exact shift-corrected cross-tile combine (tiny, in XLA) --------------------
    rows = np.minimum(n_tile, N - np.arange(num_n_tiles) * n_tile)
    cols = np.minimum(l_tile, L_out - np.arange(num_l_tiles) * l_tile)
    counts = jnp.asarray((rows[:, None] * cols[None, :]).astype(np.float32))
    S = stats[:, :, 0, 0]
    Q = stats[:, :, 1, 0]
    Csh = stats[:, :, 2, 0]
    n_total = jnp.float32(N * L_out)
    mean = jnp.sum(S + counts * Csh) / n_total
    delta = mean - Csh
    m2 = jnp.sum(Q - 2.0 * delta * S + counts * delta * delta)
    var = jnp.maximum(m2 / n_total, 0.0)
    scale = bn_gamma[0].astype(jnp.float32) * jax.lax.rsqrt(var + jnp.float32(bn_eps))
    shift = bn_beta[0].astype(jnp.float32) - mean * scale

    params2 = jnp.concatenate([w5 * scale, (b5 * scale + shift)[None]]).astype(jnp.float32)

    # ---- phase 2: conv with BN folded into the weights, lane-dense output ----------
    out_p = pl.pallas_call(
        functools.partial(_conv5_affine_kernel, l_tile=l_tile),
        out_shape=jax.ShapeDtypeStruct((n_pad, lp_out), jnp.float32),
        grid=grid,
        in_specs=in_specs,
        out_specs=pl.BlockSpec((n_tile, l_tile), lambda i, j: (i, j)),
        scratch_shapes=scratch,
        compiler_params=comp,
    )(params2, xp, xp)

    return out_p[:N, :L_out][:, None, :]           # back to (N, 1, L-4)


def _reference(x, conv_w, conv_b, bn_gamma, bn_beta, eps=1e-5):
    """Pure-JAX reference (conv -> conv -> batchnorm with training-mode batch stats)."""
    def conv1d(v):  # v: (N, 1, L)
        return jax.lax.conv_general_dilated(
            v, conv_w, window_strides=(1,), padding="VALID",
            dimension_numbers=("NCH", "OIH", "NCH"),
        ) + conv_b[None, :, None]

    x1 = conv1d(x)
    x2 = conv1d(x1)
    mean = jnp.mean(x2)
    var = jnp.mean((x2 - mean) ** 2)
    return (x2 - mean) / jnp.sqrt(var + eps) * bn_gamma[0] + bn_beta[0]


if __name__ == "__main__":
    key = jax.random.PRNGKey(0)
    k_x, k_w, k_b = jax.random.split(key, 3)

    # Small shapes consistent with the module: N=2, C=1, L=16
    N, C, L = 2, 1, 16
    x = jax.random.normal(k_x, (N, C, L), dtype=jnp.float32)

    # Deterministic Conv1d(1, 1, 3) parameters (PyTorch-style uniform(-1/sqrt(3), 1/sqrt(3)))
    bound = 1.0 / jnp.sqrt(3.0)
    conv_w = jax.random.uniform(k_w, (1, 1, 3), jnp.float32, -bound, bound)
    conv_b = jax.random.uniform(k_b, (1,), jnp.float32, -bound, bound)

    # BatchNorm1d(1) default affine params
    bn_gamma = jnp.ones((1,), jnp.float32)
    bn_beta = jnp.zeros((1,), jnp.float32)

    out = model_forward(x, conv_w, conv_b, bn_gamma, bn_beta)
    out = jax.block_until_ready(out)

    ref = _reference(x, conv_w, conv_b, bn_gamma, bn_beta)
    assert out.shape == (N, 1, L - 4)
    assert jnp.allclose(out, ref, atol=1e-4, rtol=1e-4), "mismatch vs reference"

    print("KERNEL_OK")
</pallas_src>

<mosaic_0001>
module attributes {stable_mosaic.version = 11 : i64} {
  func.func @_conv5_stats_kernel(%arg0: i32, %arg1: i32, %arg2: memref<6xf32, #tpu.memory_space<smem>>, %arg3: memref<8x128xf32, #tpu.memory_space<vmem>>, %arg4: memref<8x128xf32, #tpu.memory_space<vmem>>, %arg5: memref<1x1x8x128xf32, #tpu.memory_space<vmem>>, %arg6: memref<8x256xf32, #tpu.memory_space<vmem>>) attributes {dimension_semantics = [#tpu.dimension_semantics<parallel>, #tpu.dimension_semantics<parallel>], iteration_bounds = array<i64: 1, 1>, scalar_prefetch = 0 : i64, scratch_operands = 1 : i64, tpu.core_type = #tpu.core_type<tc>, window_params = [{transform_indices = @transform_0, window_bounds = array<i64: 6>}, {transform_indices = @transform_1, window_bounds = array<i64: 8, 128>}, {transform_indices = @transform_2, window_bounds = array<i64: 8, 128>}, {transform_indices = @transform_3, window_bounds = array<i64: 1, 1, 8, 128>}]} {
    %c0 = arith.constant 0 : index
    %c0_0 = arith.constant 0 : index
    %0 = vector.load %arg3[%c0, %c0_0] : memref<8x128xf32, #tpu.memory_space<vmem>>, vector<8x128xf32>
    %c0_1 = arith.constant 0 : index
    %c0_2 = arith.constant 0 : index
    %1 = vector.load %arg6[%c0_1, %c0_2] : memref<8x256xf32, #tpu.memory_space<vmem>>, vector<8x128xf32>
    tpu.vector_store %arg6[%c0_1, %c0_2], %0 {strides = array<i32>} : memref<8x256xf32, #tpu.memory_space<vmem>>, vector<8x128xf32>,
    %c0_3 = arith.constant 0 : index
    %c0_4 = arith.constant 0 : index
    %2 = vector.load %arg4[%c0_3, %c0_4] : memref<8x128xf32, #tpu.memory_space<vmem>>, vector<8x128xf32>
    %c0_5 = arith.constant 0 : index
    %c128 = arith.constant 128 : index
    %3 = vector.load %arg6[%c0_5, %c128] : memref<8x256xf32, #tpu.memory_space<vmem>>, vector<8x128xf32>
    tpu.vector_store %arg6[%c0_5, %c128], %2 {strides = array<i32>} : memref<8x256xf32, #tpu.memory_space<vmem>>, vector<8x128xf32>,
    %c0_6 = arith.constant 0 : index
    %c0_7 = arith.constant 0 : index
    %4 = vector.load %arg6[%c0_6, %c0_7] : memref<8x256xf32, #tpu.memory_space<vmem>>, vector<8x256xf32>
    %5 = vector.extract_strided_slice %4 {offsets = [0, 0], sizes = [8, 128], strides = [1, 1]} : vector<8x256xf32> to vector<8x128xf32>
    %c0_8 = arith.constant 0 : index
    %6 = memref.load %arg2[%c0_8] : memref<6xf32, #tpu.memory_space<smem>>
    %7 = vector.broadcast %6 : f32 to vector<8x128xf32>
    %8 = arith.mulf %5, %7 : vector<8x128xf32>
    %c255_i32 = arith.constant 255 : i32
    %9 = tpu.dynamic_rotate %4 by %c255_i32 dim 1 : vector<8x256xf32>, i32 -> vector<8x256xf32>
    %10 = vector.extract_strided_slice %9 {offsets = [0, 0], sizes = [8, 128], strides = [1, 1]} : vector<8x256xf32> to vector<8x128xf32>
    %c1 = arith.constant 1 : index
    %11 = memref.load %arg2[%c1] : memref<6xf32, #tpu.memory_space<smem>>
    %12 = vector.broadcast %11 : f32 to vector<8x128xf32>
    %13 = arith.mulf %10, %12 : vector<8x128xf32>
    %14 = arith.addf %8, %13 : vector<8x128xf32>
    %c254_i32 = arith.constant 254 : i32
    %15 = tpu.dynamic_rotate %4 by %c254_i32 dim 1 : vector<8x256xf32>, i32 -> vector<8x256xf32>
    %16 = vector.extract_strided_slice %15 {offsets = [0, 0], sizes = [8, 128], strides = [1, 1]} : vector<8x256xf32> to vector<8x128xf32>
    %c2 = arith.constant 2 : index
    %17 = memref.load %arg2[%c2] : memref<6xf32, #tpu.memory_space<smem>>
    %18 = vector.broadcast %17 : f32 to vector<8x128xf32>
    %19 = arith.mulf %16, %18 : vector<8x128xf32>
    %20 = arith.addf %14, %19 : vector<8x128xf32>
    %c253_i32 = arith.constant 253 : i32
    %21 = tpu.dynamic_rotate %4 by %c253_i32 dim 1 : vector<8x256xf32>, i32 -> vector<8x256xf32>
    %22 = vector.extract_strided_slice %21 {offsets = [0, 0], sizes = [8, 128], strides = [1, 1]} : vector<8x256xf32> to vector<8x128xf32>
    %c3 = arith.constant 3 : index
    %23 = memref.load %arg2[%c3] : memref<6xf32, #tpu.memory_space<smem>>
    %24 = vector.broadcast %23 : f32 to vector<8x128xf32>
    %25 = arith.mulf %22, %24 : vector<8x128xf32>
    %26 = arith.addf %20, %25 : vector<8x128xf32>
    %c252_i32 = arith.constant 252 : i32
    %27 = tpu.dynamic_rotate %4 by %c252_i32 dim 1 : vector<8x256xf32>, i32 -> vector<8x256xf32>
    %28 = vector.extract_strided_slice %27 {offsets = [0, 0], sizes = [8, 128], strides = [1, 1]} : vector<8x256xf32> to vector<8x128xf32>
    %c4 = arith.constant 4 : index
    %29 = memref.load %arg2[%c4] : memref<6xf32, #tpu.memory_space<smem>>
    %30 = vector.broadcast %29 : f32 to vector<8x128xf32>
    %31 = arith.mulf %28, %30 : vector<8x128xf32>
    %32 = arith.addf %26, %31 : vector<8x128xf32>
    %c5 = arith.constant 5 : index
    %33 = memref.load %arg2[%c5] : memref<6xf32, #tpu.memory_space<smem>>
    %34 = vector.broadcast %33 : f32 to vector<8x128xf32>
    %35 = arith.addf %32, %34 : vector<8x128xf32>
    %36 = vector.shape_cast %35 : vector<8x128xf32> to vector<1x8x128xf32>
    %cst = arith.constant dense<0.000000e+00> : vector<1xf32>
    %37 = vector.multi_reduction <add>, %36, %cst [1, 2] : vector<1x8x128xf32> to vector<1xf32>
    %38 = vector.shape_cast %37 : vector<1xf32> to vector<1x1x1xf32>
    %39 = vector.extract %38[0, 0, 0] : f32 from vector<1x1x1xf32>
    %cst_9 = arith.constant 9.765625E-4 : f32
    %40 = arith.mulf %39, %cst_9 : f32
    %41 = vector.broadcast %40 : f32 to vector<8x128xf32>
    %42 = arith.subf %35, %41 : vector<8x128xf32>
    %cst_10 = arith.constant 0.000000e+00 : f32
    %43 = vector.broadcast %cst_10 : f32 to vector<8x1xf32>
    %cst_11 = arith.constant 0.000000e+00 : f32
    %44 = vector.broadcast %cst_11 : f32 to vector<8x1xf32>
    %45 = tpu.iota {dimensions = array<i32: 1>} : vector<8x128xi32>
    %c0_i32 = arith.constant 0 : i32
    %46 = vector.broadcast %c0_i32 : i32 to vector<8x128xi32>
    %47 = arith.addi %46, %45 : vector<8x128xi32>
    %c12_i32 = arith.constant 12 : i32
    %48 = vector.broadcast %c12_i32 : i32 to vector<8x128xi32>
    %49 = arith.cmpi slt, %47, %48 : vector<8x128xi32>
    %cst_12 = arith.constant 0.000000e+00 : f32
    %50 = vector.broadcast %cst_12 : f32 to vector<8x128xf32>
    %51 = arith.select %49, %42, %50 : vector<8x128xi1>, vector<8x128xf32>
    %cst_13 = arith.constant dense<0.000000e+00> : vector<8xf32>
    %52 = vector.multi_reduction <add>, %51, %cst_13 [1] : vector<8x128xf32> to vector<8xf32>
    %53 = vector.shape_cast %52 : vector<8xf32> to vector<8x1xf32>
    %54 = arith.addf %43, %53 : vector<8x1xf32>
    %55 = arith.mulf %51, %51 : vector<8x128xf32>
    %cst_14 = arith.constant dense<0.000000e+00> : vector<8xf32>
    %56 = vector.multi_reduction <add>, %55, %cst_14 [1] : vector<8x128xf32> to vector<8xf32>
    %57 = vector.shape_cast %56 : vector<8xf32> to vector<8x1xf32>
    %58 = arith.addf %44, %57 : vector<8x1xf32>
    %c8_i32 = arith.constant 8 : i32
    %59 = arith.muli %arg0, %c8_i32 : i32
    %60 = tpu.iota {dimensions = array<i32: 0>} : vector<8x1xi32>
    %61 = vector.broadcast %59 : i32 to vector<8x1xi32>
    %62 = arith.addi %61, %60 : vector<8x1xi32>
    %c2_i32 = arith.constant 2 : i32
    %63 = vector.broadcast %c2_i32 : i32 to vector<8x1xi32>
    %64 = arith.cmpi slt, %62, %63 : vector<8x1xi32>
    %cst_15 = arith.constant 0.000000e+00 : f32
    %65 = vector.broadcast %cst_15 : f32 to vector<8x1xf32>
    %66 = arith.select %64, %54, %65 : vector<8x1xi1>, vector<8x1xf32>
    %cst_16 = arith.constant 0.000000e+00 : f32
    %67 = vector.broadcast %cst_16 : f32 to vector<8x1xf32>
    %68 = arith.select %64, %58, %67 : vector<8x1xi1>, vector<8x1xf32>
    %69 = vector.shape_cast %66 : vector<8x1xf32> to vector<1x8x1xf32>
    %cst_17 = arith.constant dense<0.000000e+00> : vector<1xf32>
    %70 = vector.multi_reduction <add>, %69, %cst_17 [1, 2] : vector<1x8x1xf32> to vector<1xf32>
    %71 = vector.shape_cast %70 : vector<1xf32> to vector<1x1x1xf32>
    %72 = vector.extract %71[0, 0, 0] : f32 from vector<1x1x1xf32>
    %73 = vector.shape_cast %68 : vector<8x1xf32> to vector<1x8x1xf32>
    %cst_18 = arith.constant dense<0.000000e+00> : vector<1xf32>
    %74 = vector.multi_reduction <add>, %73, %cst_18 [1, 2] : vector<1x8x1xf32> to vector<1xf32>
    %75 = vector.shape_cast %74 : vector<1xf32> to vector<1x1x1xf32>
    %76 = vector.extract %75[0, 0, 0] : f32 from vector<1x1x1xf32>
    %77 = tpu.iota {dimensions = array<i32: 0>} : vector<8x128xi32>
    %c0_i32_19 = arith.constant 0 : i32
    %78 = vector.broadcast %c0_i32_19 : i32 to vector<8x128xi32>
    %79 = arith.cmpi eq, %77, %78 : vector<8x128xi32>
    %cst_20 = arith.constant 0.000000e+00 : f32
    %80 = vector.broadcast %72 : f32 to vector<8x128xf32>
    %81 = vector.broadcast %cst_20 : f32 to vector<8x128xf32>
    %82 = arith.select %79, %80, %81 : vector<8x128xi1>, vector<8x128xf32>
    %c1_i32 = arith.constant 1 : i32
    %83 = vector.broadcast %c1_i32 : i32 to vector<8x128xi32>
    %84 = arith.cmpi eq, %77, %83 : vector<8x128xi32>
    %cst_21 = arith.constant 0.000000e+00 : f32
    %85 = vector.broadcast %76 : f32 to vector<8x128xf32>
    %86 = vector.broadcast %cst_21 : f32 to vector<8x128xf32>
    %87 = arith.select %84, %85, %86 : vector<8x128xi1>, vector<8x128xf32>
    %88 = arith.addf %82, %87 : vector<8x128xf32>
    %c2_i32_22 = arith.constant 2 : i32
    %89 = vector.broadcast %c2_i32_22 : i32 to vector<8x128xi32>
    %90 = arith.cmpi eq, %77, %89 : vector<8x128xi32>
    %cst_23 = arith.constant 0.000000e+00 : f32
    %91 = vector.broadcast %40 : f32 to vector<8x128xf32>
    %92 = vector.broadcast %cst_23 : f32 to vector<8x128xf32>
    %93 = arith.select %90, %91, %92 : vector<8x128xi1>, vector<8x128xf32>
    %94 = arith.addf %88, %93 : vector<8x128xf32>
    %95 = vector.shape_cast %94 : vector<8x128xf32> to vector<1x1x8x128xf32>
    %c0_24 = arith.constant 0 : index
    %c0_25 = arith.constant 0 : index
    %c0_26 = arith.constant 0 : index
    %c0_27 = arith.constant 0 : index
    %96 = vector.load %arg5[%c0_24, %c0_25, %c0_26, %c0_27] : memref<1x1x8x128xf32, #tpu.memory_space<vmem>>, vector<1x1x8x128xf32>
    tpu.vector_store %arg5[%c0_24, %c0_25, %c0_26, %c0_27], %95 {strides = array<i32>} : memref<1x1x8x128xf32, #tpu.memory_space<vmem>>, vector<1x1x8x128xf32>,
    return
  }
  func.func @transform_0(%arg0: i32, %arg1: i32) -> i32 {
    %c0_i32 = arith.constant 0 : i32
    %c0_i32_0 = arith.constant 0 : i32
    return %c0_i32 : i32
  }
  func.func @transform_1(%arg0: i32, %arg1: i32) -> (i32, i32) {
    %c0_i32 = arith.constant 0 : i32
    return %arg0, %arg1 : i32, i32
  }
  func.func @transform_2(%arg0: i32, %arg1: i32) -> (i32, i32) {
    %c1_i32 = arith.constant 1 : i32
    %0 = arith.addi %arg1, %c1_i32 : i32
    %c1_i32_0 = arith.constant 1 : i32
    %1 = arith.muli %0, %c1_i32_0 : i32
    %c0_i32 = arith.constant 0 : i32
    return %arg0, %1 : i32, i32
  }
  func.func @transform_3(%arg0: i32, %arg1: i32) -> (i32, i32, i32, i32) {
    %c0_i32 = arith.constant 0 : i32
    %c0_i32_0 = arith.constant 0 : i32
    %c0_i32_1 = arith.constant 0 : i32
    return %arg0, %arg1, %c0_i32, %c0_i32_0 : i32, i32, i32, i32
  }
}

</mosaic_0001>

<bundles_post_ra>
// kernel: tpu_custom_call.1
= control target key start
LH: loop header
LB: loop body
LE: loop exit
PB: predicated region body
PF: predicated region fallthrough
CT: control target
= control target key end

     0   :  { %8 = vsyncpa [#allocation6], 0  ;;  %s375_s0 = inlined_call_operand.hbm [shape: f32[6], index: 0, kind: input, shape index: {}]   ;;  %s376_s1 = inlined_call_operand.hbm [shape: f32[8,256], index: 1, kind: input, shape index: {}]   ;;  %s377_s2 = inlined_call_operand.hbm [shape: f32[8,256], index: 2, kind: input, shape index: {}]   ;;  %s378_s3 = inlined_call_operand.hbm [shape: f32[1,1,8,128], index: 3, kind: output, shape index: {}]  }
   0x1   :  { %9 = vsyncpa [#allocation4], 0 }
   0x2   :  { %10 = vsyncpa [#allocation9], 0 }
   0x3   :  { %11 = vsyncpa [#allocation5], 0  ;;  %s206_s14 = scalar_lea.hbm %s375_s0, 16 }
   0x4   :  { %p207_p0 = scmp.ne.s32.totalorder %s375_s0, %s206_s14  ;;  %p210_p1 = scmp.lt.u32.totalorder %s206_s14, %s375_s0 }
   0x6   :  { %p212_p2 = pnand %p210_p1, %p207_p0 }
   0x8   :  { %215 = shalt.err (!%p212_p2)
}
   0x9   :  { %s293_s19 = smov [#allocation3]   ;;  %s294_s22 = smov [#allocation7]  }
   0xa   :  { %19 = dma.hbm_to_smem %s375_s0, 16, %s293_s19, [#allocation6]  }
   0xb   :  { %s26_s23 = sshll.u32 %s294_s22, 4  ;;  %s336_s26 = scalar_lea.hbm %s377_s2, 128  ;;  %s27_s23 = int_to_ptr.vmem [resolvable:$true] %s26_s23 }
   0xc   :  { %s216_s29 = scalar_lea.hbm %s376_s1, 128  ;;  %s218_s0 = scalar_lea.hbm %s376_s1, 256 }
   0xd   :  { %p217_p3 = scmp.ne.s32.totalorder %s376_s1, %s216_s29  ;;  %p219_p4 = scmp.lt.u32.totalorder %s218_s0, %s216_s29 }
   0xe   :  { %p220_p5 = scmp.lt.u32.totalorder %s216_s29, %s376_s1 }
  0x10   :  { %p221_p6 = por %p220_p5, %p219_p4 }
  0x12   :  { %p222_p7 = pnand %p221_p6, %p217_p3 }
  0x14   :  { %225 = shalt.err (!%p222_p7)
}
  0x15   :  { %s226_s9 = scalar_lea.vmem %s27_s23, 128  ;;  %p231_p9 = scmp.lt.s32.totalorder %s27_s23, %s27_s23 }
  0x16   :  { %p227_p8 = scmp.ne.s32.totalorder %s27_s23, %s226_s9  ;;  %p232_p10 = scmp.lt.s32.totalorder %s226_s9, %s226_s9 }
  0x18   :  { %p233_p11 = por %p232_p10, %p231_p9 }
  0x1a   :  { %p234_p12 = pnand %p233_p11, %p227_p8 }
  0x1c   :  { %237 = shalt.err (!%p234_p12)
}
  0x1d   :  { %29 = dma.hbm_to_vmem [thread:$0]  %s376_s1, 128, %s27_s23, [#allocation4]  }
  0x1e   :  { %s295_s12 = smov [#allocation8]   ;;  %s262_s16 = scalar_lea.hbm %s377_s2, 256 }
  0x1f   :  { %s39_s13 = sshll.u32 %s295_s12, 4  ;;  %p239_p13 = scmp.ne.s32.totalorder %s336_s26, %s262_s16  ;;  %s40_s13 = int_to_ptr.vmem [resolvable:$true] %s39_s13 }
  0x20   :  { %p241_p0 = scmp.lt.u32.totalorder %s336_s26, %s377_s2  ;;  %p242_p1 = scmp.lt.u32.totalorder %s262_s16, %s262_s16 }
  0x21   :  { %p244_p3 = scmp.lt.u32.totalorder %s262_s16, %s336_s26 }
  0x22   :  { %p243_p2 = por %p242_p1, %p241_p0 }
  0x24   :  { %p245_p4 = por %p244_p3, %p243_p2 }
  0x26   :  { %p246_p5 = pnand %p245_p4, %p239_p13 }
  0x28   :  { %249 = shalt.err (!%p246_p5)
}
  0x29   :  { %s250_s19 = scalar_lea.vmem %s40_s13, 128  ;;  %p255_p7 = scmp.lt.s32.totalorder %s40_s13, %s40_s13 }
  0x2a   :  { %p251_p6 = scmp.ne.s32.totalorder %s40_s13, %s250_s19  ;;  %p256_p8 = scmp.lt.s32.totalorder %s250_s19, %s250_s19 }
  0x2c   :  { %p257_p9 = por %p256_p8, %p255_p7 }
  0x2e   :  { %p258_p10 = pnand %p257_p9, %p251_p6 }
  0x30   :  { %261 = shalt.err (!%p258_p10)
}
  0x31   :  { %42 = dma.hbm_to_vmem [thread:$0]  %s336_s26, 128, %s40_s13, [#allocation9]  }
  0x32   :  { %285 = dma.done.wait [#allocation6], 16  }
  0x33   :  { %286 = vsyncadd [#allocation6], 4294967280 }
  0x34   :  { %287 = dma.done.wait [#allocation4], 128  }
  0x35   :  { %288 = vsyncadd [#allocation4], 4294967168 }
  0x36   :  { %289 = dma.done.wait [#allocation9], 128  }
  0x37   :  { %290 = vsyncadd [#allocation9], 4294967168 }
  0x38   :  { %52 = sfence }
  0x39   :  { %v54_v0 = vld [vmem:[#allocation7] sm:$0xff]  ;;  %s296_s1 = smov 126   ;;  %s297_s2 = smov 127   ;;  %v56_v1 = vld [vmem:[#allocation8] sm:$0xff]  ;;  %v67_v2 = vlaneseq  ;;  %vm137_vm6 = vcmask 7168  }
  0x3a   :  { %75 = vrot.lane.b32.xlu1 %v54_v0, %s296_s1  ;;  %63 = vrot.lane.b32.xlu0 %v54_v0, %s297_s2  ;;  %s298_s20 = smov 125   ;;  %s299_s21 = smov 124  }
  0x3b   :  { %s60_s22 = sld [smem:[#allocation3]]  ;;  %s187_s23 = sld [smem:[#allocation3 + $0x1]]  ;;  %v68_v3 = vand.u32 127, %v67_v2  ;;  %v131_v43 = vshrl.u32 %v67_v2, 7 }
  0x3c   :  { %s188_s24 = sld [smem:[#allocation3 + $0x2]]  ;;  %s189_s25 = sld [smem:[#allocation3 + $0x3]] }
  0x3d   :  { %vm79_vm0 = vcmp.lt.s32.totalorder %v68_v3, 126  ;;  %vm69_vm1 = vcmp.lt.s32.totalorder %v68_v3, 127  ;;  %s190_s26 = sld [smem:[#allocation3 + $0x4]]  ;;  %vm89_vm2 = vcmp.lt.s32.totalorder %v68_v3, 125  ;;  %s191_s27 = sld [smem:[#allocation3 + $0x5]]  ;;  %vm99_vm3 = vcmp.lt.s32.totalorder %v68_v3, 124 }
  0x3e   :  { %77 = vrot.lane.b32.xlu1 %v56_v1, %s296_s1  ;;  %65 = vrot.lane.b32.xlu0 %v56_v1, %s297_s2  ;;  %vm120_vm4 = vcmp.lt.s32.totalorder %v68_v3, 12  ;;  %vm134_vm5 = vcmp.lt.s32.totalorder %v131_v43, 2  ;;  %vm158_vm7 = vcmp.eq.s32.totalorder %v131_v43, 0  ;;  %vm161_vm8 = vcmp.eq.s32.totalorder %v131_v43, 1  ;;  %s300_s5 = smov [#allocation10]  }
  0x3f   :  { %vm165_vm9 = vcmp.eq.s32.totalorder %v131_v43, 2  ;;  %s175_s6 = sshll.u32 %s300_s5, 4  ;;  %s176_s6 = int_to_ptr.vmem [resolvable:$true] %s175_s6 }
  0x40   :  { %s263_s0 = scalar_lea.vmem %s176_s6, 128  ;;  %p268_p12 = scmp.lt.s32.totalorder %s176_s6, %s176_s6 }
  0x41   :  { %v61_v6 = vstv %s60_s22  ;;  %v72_v7 = vstv %s187_s23  ;;  %p264_p11 = scmp.ne.s32.totalorder %s176_s6, %s263_s0  ;;  %p269_p13 = scmp.lt.s32.totalorder %s263_s0, %s263_s0 }
  0x42   :  { %87 = vrot.lane.b32.xlu1 %v56_v1, %s298_s20  ;;  %85 = vrot.lane.b32.xlu0 %v54_v0, %s298_s20  ;;  %v62_v10 = vmul.f32 %v61_v6, %v54_v0  ;;  %v82_v11 = vstv %s188_s24  ;;  %v92_v15 = vstv %s189_s25 }
  0x43   :  { %v102_v23 = vstv %s190_s26  ;;  %v106_v29 = vstv %s191_s27  ;;  %p270_p0 = por %p269_p13, %p268_p12 }
  0x45   :  { %p271_p1 = pnand %p270_p0, %p264_p11 }
  0x46   :  { %97 = vrot.lane.b32.xlu1 %v56_v1, %s299_s21  ;;  %95 = vrot.lane.b32.xlu0 %v54_v0, %s299_s21 }
  0xac   :  { %v76_v4 = vpop.permute.xlu1 %75  ;;  %v64_v5 = vpop.permute.xlu0 %63 }
  0xb0   :  { %v78_v8 = vpop.permute.xlu1 %77  ;;  %v66_v9 = vpop.permute.xlu0 %65 }
  0xb1   :  { %v80_v12 = vsel %vm79_vm0, %v76_v4, %v78_v8  ;;  %v70_v13 = vsel %vm69_vm1, %v64_v5, %v66_v9 }
  0xb2   :  { %v73_v14 = vmul.f32 %v72_v7, %v70_v13  ;;  %v83_v16 = vmul.f32 %v82_v11, %v80_v12 }
  0xb4   :  { %v74_v17 = vadd.f32 %v73_v14, %v62_v10  ;;  %v88_v18 = vpop.permute.xlu1 %87  ;;  %v86_v19 = vpop.permute.xlu0 %85 }
  0xb5   :  { %v90_v20 = vsel %vm89_vm2, %v86_v19, %v88_v18 }
  0xb6   :  { %v84_v21 = vadd.f32 %v83_v16, %v74_v17  ;;  %v93_v22 = vmul.f32 %v92_v15, %v90_v20 }
  0xb8   :  { %v98_v24 = vpop.permute.xlu1 %97  ;;  %v96_v25 = vpop.permute.xlu0 %95  ;;  %v94_v27 = vadd.f32 %v93_v22, %v84_v21 }
  0xb9   :  { %v100_v26 = vsel %vm99_vm3, %v96_v25, %v98_v24 }
  0xba   :  { %v103_v28 = vmul.f32 %v102_v23, %v100_v26 }
  0xbc   :  { %v104_v30 = vadd.f32 %v103_v28, %v94_v27 }
  0xbe   :  { %v107_v31 = vadd.f32 %v106_v29, %v104_v30 }
  0xc0   :  { %108 = vadd.xlane.f32.xlu0 %v107_v31 }
 0x14d   :  { %v109_v32 = vpop.xlane.xlu0 %108 }
 0x14e   :  { %v110_v33 = vrot.slane %v109_v32, 4 }
 0x150   :  { %v111_v34 = vadd.f32 %v110_v33, %v109_v32 }
 0x152   :  { %v112_v35 = vrot.slane %v111_v34, 2 }
 0x154   :  { %v113_v36 = vadd.f32 %v112_v35, %v111_v34 }
 0x156   :  { %v114_v37 = vrot.slane %v113_v36, 1 }
 0x158   :  { %v115_v38 = vadd.f32 %v114_v37, %v113_v36 }
 0x15a   :  { %192 = vpush %v115_v38 }
 0x18b   :  { %s193_s28 = spop %192 }
 0x18c   :  { %s117_s29 = smul.f32 0.0009765625, %s193_s28 }
 0x18e   :  { %v118_v39 = vstv %s117_s29 }
 0x18f   :  { %v119_v40 = vsub.f32 %v107_v31, %v118_v39  ;;  %v166_v5 = vsel %vm165_vm9, %v118_v39, 0.0 }
 0x191   :  { %v121_v41 = vsel %vm120_vm4, %v119_v40, 0.0 }
 0x192   :  { %122 = vadd.xlane.f32.xlu1 %v121_v41  ;;  %v125_v42 = vmul.f32 %v121_v41, %v121_v41 }
 0x194   :  { %126 = vadd.xlane.f32.xlu0 %v125_v42 }
 0x21f   :  { %v123_v44 = vpop.xlane.xlu1 %122 }
 0x220   :  { %v135_v45 = vsel %vm134_vm5, %v123_v44, 0.0 }
 0x221   :  { %v127_v46 = vpop.xlane.xlu0 %126  ;;  %v138_v47 = vsel %vm137_vm6, %v135_v45, 0.0 }
 0x222   :  { %v136_v48 = vsel %vm134_vm5, %v127_v46, 0.0  ;;  %139 = vadd.xlane.f32.xlu0 %v138_v47 }
 0x223   :  { %v148_v49 = vsel %vm137_vm6, %v136_v48, 0.0 }
 0x224   :  { %149 = vadd.xlane.f32.xlu1 %v148_v49 }
 0x2af   :  { %v140_v50 = vpop.xlane.xlu0 %139 }
 0x2b0   :  { %v141_v51 = vrot.slane %v140_v50, 4 }
 0x2b1   :  { %v150_v52 = vpop.xlane.xlu1 %149 }
 0x2b2   :  { %v142_v53 = vadd.f32 %v141_v51, %v140_v50  ;;  %v151_v54 = vrot.slane %v150_v52, 4 }
 0x2b4   :  { %v143_v55 = vrot.slane %v142_v53, 2  ;;  %v152_v56 = vadd.f32 %v151_v54, %v150_v52 }
 0x2b6   :  { %v144_v57 = vadd.f32 %v143_v55, %v142_v53  ;;  %v153_v58 = vrot.slane %v152_v56, 2 }
 0x2b8   :  { %v154_v59 = vadd.f32 %v153_v58, %v152_v56  ;;  %v145_v60 = vrot.slane %v144_v57, 1 }
 0x2ba   :  { %v146_v61 = vadd.f32 %v145_v60, %v144_v57  ;;  %v155_v62 = vrot.slane %v154_v59, 1 }
 0x2bc   :  { %194 = vpush %v146_v61  ;;  %v156_v63 = vadd.f32 %v155_v62, %v154_v59 }
 0x2be   :  { %196 = vpush %v156_v63 }
 0x2ed   :  { %s195_s30 = spop %194 }
 0x2ee   :  { %v159_v0 = vstv %s195_s30 }
 0x2ef   :  { %s197_s4 = spop %196  ;;  %v160_v2 = vsel %vm158_vm7, %v159_v0, 0.0 }
 0x2f0   :  { %v162_v1 = vstv %s197_s4 }
 0x2f1   :  { %v163_v3 = vsel %vm161_vm8, %v162_v1, 0.0 }
 0x2f2   :  { %v164_v4 = vadd.f32 %v163_v3, %v160_v2 }
 0x2f4   :  { %v167_v6 = vadd.f32 %v166_v5, %v164_v4 }
 0x2f6   :  { %168 = vst [vmem:[#allocation10] sm:$0xff] %v167_v6 }
 0x2f7   :  { %274 = shalt.err (!%p271_p1)
}
 0x2f8   :  { %s275_s9 = scalar_lea.hbm %s378_s3, 128 }
 0x2f9   :  { %p276_p2 = scmp.ne.s32.totalorder %s378_s3, %s275_s9  ;;  %p279_p3 = scmp.lt.u32.totalorder %s275_s9, %s378_s3 }
 0x2fb   :  { %p281_p4 = pnand %p279_p3, %p276_p2 }
 0x2fd   :  { %284 = shalt.err (!%p281_p4)
}
 0x2fe   :  { %178 = dma.vmem_to_hbm [thread:$0]  %s176_s6, 128, %s378_s3, [#allocation5]  }
 0x2ff   :  { %291 = dma.done.wait [#allocation5], 128  }
 0x300   :  { %292 = vsyncadd [#allocation5], 4294967168 }
 0x301   :  { %182 = vsyncpa [#allocation4], 1 }
 0x302   :  { %183 = vsyncpa [#allocation9], 1 }
 0x303   :  { %184 = vsyncpa [#allocation5], 1 }
 0x304   :  { %185 = vsyncpa [#allocation6], 1 }

</bundles_post_ra>
